<compile_context>
chip_gen: v5e
topology: v5e:2x2
jax: 0.10.0
libtpu: 0.0.40
codegen_flags: <defaults>
</compile_context>

<pallas_src>
import math

import jax
import jax.numpy as jnp
from jax.experimental import pallas as pl
from jax.experimental.pallas import tpu as pltpu

DIM_PERHEAD = 32

# Per-block byte target: 3 big arrays * 2 pipeline buffers * 2 MiB = 12 MiB,
# comfortably inside the scoped-VMEM limit requested below on v5e/v6e/v7x.
_TARGET_BLOCK_BYTES = 2 * 1024 * 1024
_VMEM_LIMIT_BYTES = 32 * 1024 * 1024


def _mrla_light_kernel(x_ref, o_ref, qkw_ref, vw_ref, lam_ref, out_ref):
    """Fused MRLA-light gate for one (batch, head-tile) block.

    x_ref / o_ref / out_ref : (1, Th, 32, HW)   full spatial extent per block
    qkw_ref / vw_ref / lam_ref : (1, Th, 32, 1) per-channel constants
    """
    x = x_ref[...]
    xf = x.astype(jnp.float32)

    # Global average pool over the full spatial extent (lane axis).
    pooled = jnp.mean(xf, axis=-1, keepdims=True)              # (1, Th, 32, 1)

    # q*k per channel = pooled^2 * (q_w * k_w / sqrt(dph)); sum over the head
    # (sublane axis) to get the per-head score.
    qk = pooled * pooled * qkw_ref[...]                        # (1, Th, 32, 1)
    score = jnp.sum(qk, axis=-2, keepdims=True)                # (1, Th, 1, 1)
    attn = 1.0 / (1.0 + jnp.exp(-score))                       # sigmoid

    # Fused per-channel scale = sigmoid(score_head(c)) * v_weight[c].
    scale = (attn * vw_ref[...]).astype(x.dtype)               # (1, Th, 32, 1)
    lam = lam_ref[...].astype(x.dtype)                         # (1, Th, 32, 1)

    out_ref[...] = scale * x + lam * o_ref[...]


def _heads_per_block(n_heads, hw, itemsize):
    """Largest head-count per block (divisor of n_heads) within byte budget."""
    per_head = DIM_PERHEAD * hw * itemsize
    budget = max(1, _TARGET_BLOCK_BYTES // per_head)
    th = 1
    for cand in range(1, n_heads + 1):
        if n_heads % cand == 0 and cand <= budget:
            th = cand
    return th


@jax.jit
def light_layer_attention_module(xt, ot_1, params):
    """xt, ot_1: NCHW (B, C, H, W). Returns NCHW output."""
    B, C, H, W = xt.shape
    assert C % DIM_PERHEAD == 0, "input_dim must be a multiple of dim_perhead"
    HW = H * W
    heads = C // DIM_PERHEAD

    qw = params["q_w"].reshape(C).astype(jnp.float32)
    kw = params["k_w"].reshape(C).astype(jnp.float32)
    vw = params["v_w"].reshape(C).astype(jnp.float32)
    lam = params["lambda_t"].reshape(C).astype(jnp.float32)

    # Per-channel constants, laid out as (1, heads, 32, 1).
    qkw4 = (qw * kw / math.sqrt(DIM_PERHEAD)).reshape(1, heads, DIM_PERHEAD, 1)
    vw4 = vw.reshape(1, heads, DIM_PERHEAD, 1)
    lam4 = lam.reshape(1, heads, DIM_PERHEAD, 1)

    # Free (row-major compatible) reshapes: NCHW -> (B, heads, 32, H*W).
    x4 = xt.reshape(B, heads, DIM_PERHEAD, HW)
    o4 = ot_1.reshape(B, heads, DIM_PERHEAD, HW).astype(xt.dtype)

    itemsize = jnp.dtype(xt.dtype).itemsize
    Th = _heads_per_block(heads, HW, itemsize)
    grid = (B, heads // Th)

    block_bytes = Th * DIM_PERHEAD * HW * itemsize
    vmem_limit = min(64 * 1024 * 1024, max(_VMEM_LIMIT_BYTES, 8 * block_bytes))

    nbytes = B * C * HW * itemsize
    cost = pl.CostEstimate(
        flops=5 * B * C * HW + 6 * B * C,
        transcendentals=B * heads,
        bytes_accessed=3 * nbytes + 3 * C * 4,
    )

    big_spec = pl.BlockSpec((1, Th, DIM_PERHEAD, HW), lambda b, h: (b, h, 0, 0))
    const_spec = pl.BlockSpec((1, Th, DIM_PERHEAD, 1), lambda b, h: (0, h, 0, 0))

    out = pl.pallas_call(
        _mrla_light_kernel,
        out_shape=jax.ShapeDtypeStruct((B, heads, DIM_PERHEAD, HW), xt.dtype),
        grid_spec=pltpu.PrefetchScalarGridSpec(
            num_scalar_prefetch=0,
            grid=grid,
            in_specs=[big_spec, big_spec, const_spec, const_spec, const_spec],
            out_specs=big_spec,
        ),
        compiler_params=pltpu.CompilerParams(
            dimension_semantics=("parallel", "parallel"),
            vmem_limit_bytes=vmem_limit,
        ),
        cost_estimate=cost,
    )(x4, o4, qkw4, vw4, lam4)

    return out.reshape(B, C, H, W)


def _reference(xt, ot_1, params):
    """Pure-JAX reference mirroring the torch forward (NCHW)."""
    B, C, H, W = xt.shape
    heads = C // DIM_PERHEAD
    pooled = jnp.mean(xt, axis=(2, 3))                        # (B, C)  GAP
    q = pooled * params["q_w"].reshape(C)[None, :]            # depthwise 1x1
    k = pooled * params["k_w"].reshape(C)[None, :]
    s = (q * k).reshape(B, heads, DIM_PERHEAD).sum(-1) / math.sqrt(DIM_PERHEAD)
    attn = jax.nn.sigmoid(s)                                  # (B, heads)
    attn_c = jnp.repeat(attn, DIM_PERHEAD, axis=1)            # (B, C)
    v = xt * params["v_w"].reshape(C)[None, :, None, None]    # depthwise 1x1 value
    attn_t = attn_c[:, :, None, None] * v
    lam = params["lambda_t"].reshape(1, C, 1, 1)
    return attn_t + lam * ot_1


def _init_params(key, C):
    ks = jax.random.split(key, 4)
    return {
        # depthwise 1x1 conv weights (torch shape (C,1,1,1)) stored as (C,)
        "q_w": jax.random.normal(ks[0], (C,), jnp.float32) * 0.1,
        "k_w": jax.random.normal(ks[1], (C,), jnp.float32) * 0.1,
        "v_w": jax.random.normal(ks[2], (C,), jnp.float32) * 0.1,
        # nn.Parameter(torch.randn(input_dim, 1, 1))
        "lambda_t": jax.random.normal(ks[3], (C, 1, 1), jnp.float32),
    }


if __name__ == "__main__":
    key = jax.random.PRNGKey(0)
    k_x, k_o, k_p = jax.random.split(key, 3)

    B, C, H, W = 2, 64, 8, 8          # C = 2 heads of dim_perhead=32
    xt = jax.random.normal(k_x, (B, C, H, W), jnp.float32)
    ot_1 = jax.random.normal(k_o, (B, C, H, W), jnp.float32)
    params = _init_params(k_p, C)

    out = light_layer_attention_module(xt, ot_1, params)
    out = jax.block_until_ready(out)

    ref = _reference(xt, ot_1, params)
    assert out.shape == ref.shape == (B, C, H, W)
    assert jnp.allclose(out, ref, atol=1e-5, rtol=1e-5), "mismatch vs reference"

    print("KERNEL_OK")
</pallas_src>

<mosaic_0001>
module attributes {stable_mosaic.version = 11 : i64} {
  func.func @_mrla_light_kernel(%arg0: i32, %arg1: i32, %arg2: memref<1x2x32x64xf32, #tpu.memory_space<vmem>>, %arg3: memref<1x2x32x64xf32, #tpu.memory_space<vmem>>, %arg4: memref<1x2x32x1xf32, #tpu.memory_space<vmem>>, %arg5: memref<1x2x32x1xf32, #tpu.memory_space<vmem>>, %arg6: memref<1x2x32x1xf32, #tpu.memory_space<vmem>>, %arg7: memref<1x2x32x64xf32, #tpu.memory_space<vmem>>) attributes {dimension_semantics = [#tpu.dimension_semantics<parallel>, #tpu.dimension_semantics<parallel>], iteration_bounds = array<i64: 2, 1>, scalar_prefetch = 0 : i64, scratch_operands = 0 : i64, tpu.core_type = #tpu.core_type<tc>, window_params = [{transform_indices = @transform_0, window_bounds = array<i64: 1, 2, 32, 64>}, {transform_indices = @transform_1, window_bounds = array<i64: 1, 2, 32, 64>}, {transform_indices = @transform_2, window_bounds = array<i64: 1, 2, 32, 1>}, {transform_indices = @transform_3, window_bounds = array<i64: 1, 2, 32, 1>}, {transform_indices = @transform_4, window_bounds = array<i64: 1, 2, 32, 1>}, {transform_indices = @transform_5, window_bounds = array<i64: 1, 2, 32, 64>}]} {
    %c0 = arith.constant 0 : index
    %c0_0 = arith.constant 0 : index
    %c0_1 = arith.constant 0 : index
    %c0_2 = arith.constant 0 : index
    %0 = vector.load %arg2[%c0, %c0_0, %c0_1, %c0_2] : memref<1x2x32x64xf32, #tpu.memory_space<vmem>>, vector<1x2x32x64xf32>
    %cst = arith.constant dense<0.000000e+00> : vector<1x2x32xf32>
    %1 = vector.multi_reduction <add>, %0, %cst [3] : vector<1x2x32x64xf32> to vector<1x2x32xf32>
    %2 = vector.shape_cast %1 : vector<1x2x32xf32> to vector<1x2x32x1xf32>
    %cst_3 = arith.constant 6.400000e+01 : f32
    %3 = vector.broadcast %cst_3 : f32 to vector<1x2x32x1xf32>
    %4 = arith.divf %2, %3 : vector<1x2x32x1xf32>
    %5 = arith.mulf %4, %4 : vector<1x2x32x1xf32>
    %c0_4 = arith.constant 0 : index
    %c0_5 = arith.constant 0 : index
    %c0_6 = arith.constant 0 : index
    %c0_7 = arith.constant 0 : index
    %6 = vector.load %arg4[%c0_4, %c0_5, %c0_6, %c0_7] : memref<1x2x32x1xf32, #tpu.memory_space<vmem>>, vector<1x2x32x1xf32>
    %7 = arith.mulf %5, %6 : vector<1x2x32x1xf32>
    %cst_8 = arith.constant dense<0.000000e+00> : vector<1x2x1xf32>
    %8 = vector.multi_reduction <add>, %7, %cst_8 [2] : vector<1x2x32x1xf32> to vector<1x2x1xf32>
    %9 = vector.shape_cast %8 : vector<1x2x1xf32> to vector<1x2x1x1xf32>
    %cst_9 = arith.constant 0.000000e+00 : f32
    %10 = vector.broadcast %cst_9 : f32 to vector<1x2x1x1xf32>
    %11 = arith.subf %10, %9 : vector<1x2x1x1xf32>
    %12 = math.exp %11 : vector<1x2x1x1xf32>
    %cst_10 = arith.constant 1.000000e+00 : f32
    %13 = vector.broadcast %cst_10 : f32 to vector<1x2x1x1xf32>
    %14 = arith.addf %13, %12 : vector<1x2x1x1xf32>
    %cst_11 = arith.constant 1.000000e+00 : f32
    %15 = vector.broadcast %cst_11 : f32 to vector<1x2x1x1xf32>
    %16 = arith.divf %15, %14 : vector<1x2x1x1xf32>
    %c0_12 = arith.constant 0 : index
    %c0_13 = arith.constant 0 : index
    %c0_14 = arith.constant 0 : index
    %c0_15 = arith.constant 0 : index
    %17 = vector.load %arg5[%c0_12, %c0_13, %c0_14, %c0_15] : memref<1x2x32x1xf32, #tpu.memory_space<vmem>>, vector<1x2x32x1xf32>
    %18 = vector.broadcast %16 : vector<1x2x1x1xf32> to vector<1x2x32x1xf32>
    %19 = arith.mulf %18, %17 : vector<1x2x32x1xf32>
    %c0_16 = arith.constant 0 : index
    %c0_17 = arith.constant 0 : index
    %c0_18 = arith.constant 0 : index
    %c0_19 = arith.constant 0 : index
    %20 = vector.load %arg6[%c0_16, %c0_17, %c0_18, %c0_19] : memref<1x2x32x1xf32, #tpu.memory_space<vmem>>, vector<1x2x32x1xf32>
    %21 = vector.broadcast %19 : vector<1x2x32x1xf32> to vector<1x2x32x64xf32>
    %22 = arith.mulf %21, %0 : vector<1x2x32x64xf32>
    %c0_20 = arith.constant 0 : index
    %c0_21 = arith.constant 0 : index
    %c0_22 = arith.constant 0 : index
    %c0_23 = arith.constant 0 : index
    %23 = vector.load %arg3[%c0_20, %c0_21, %c0_22, %c0_23] : memref<1x2x32x64xf32, #tpu.memory_space<vmem>>, vector<1x2x32x64xf32>
    %24 = vector.broadcast %20 : vector<1x2x32x1xf32> to vector<1x2x32x64xf32>
    %25 = arith.mulf %24, %23 : vector<1x2x32x64xf32>
    %26 = arith.addf %22, %25 : vector<1x2x32x64xf32>
    %c0_24 = arith.constant 0 : index
    %c0_25 = arith.constant 0 : index
    %c0_26 = arith.constant 0 : index
    %c0_27 = arith.constant 0 : index
    %27 = vector.load %arg7[%c0_24, %c0_25, %c0_26, %c0_27] : memref<1x2x32x64xf32, #tpu.memory_space<vmem>>, vector<1x2x32x64xf32>
    tpu.vector_store %arg7[%c0_24, %c0_25, %c0_26, %c0_27], %26 {strides = array<i32>} : memref<1x2x32x64xf32, #tpu.memory_space<vmem>>, vector<1x2x32x64xf32>,
    return
  }
  func.func @transform_0(%arg0: i32, %arg1: i32) -> (i32, i32, i32, i32) {
    %c0_i32 = arith.constant 0 : i32
    %c0_i32_0 = arith.constant 0 : i32
    %c0_i32_1 = arith.constant 0 : i32
    return %arg0, %arg1, %c0_i32, %c0_i32_0 : i32, i32, i32, i32
  }
  func.func @transform_1(%arg0: i32, %arg1: i32) -> (i32, i32, i32, i32) {
    %c0_i32 = arith.constant 0 : i32
    %c0_i32_0 = arith.constant 0 : i32
    %c0_i32_1 = arith.constant 0 : i32
    return %arg0, %arg1, %c0_i32, %c0_i32_0 : i32, i32, i32, i32
  }
  func.func @transform_2(%arg0: i32, %arg1: i32) -> (i32, i32, i32, i32) {
    %c0_i32 = arith.constant 0 : i32
    %c0_i32_0 = arith.constant 0 : i32
    %c0_i32_1 = arith.constant 0 : i32
    %c0_i32_2 = arith.constant 0 : i32
    return %c0_i32, %arg1, %c0_i32_0, %c0_i32_1 : i32, i32, i32, i32
  }
  func.func @transform_3(%arg0: i32, %arg1: i32) -> (i32, i32, i32, i32) {
    %c0_i32 = arith.constant 0 : i32
    %c0_i32_0 = arith.constant 0 : i32
    %c0_i32_1 = arith.constant 0 : i32
    %c0_i32_2 = arith.constant 0 : i32
    return %c0_i32, %arg1, %c0_i32_0, %c0_i32_1 : i32, i32, i32, i32
  }
  func.func @transform_4(%arg0: i32, %arg1: i32) -> (i32, i32, i32, i32) {
    %c0_i32 = arith.constant 0 : i32
    %c0_i32_0 = arith.constant 0 : i32
    %c0_i32_1 = arith.constant 0 : i32
    %c0_i32_2 = arith.constant 0 : i32
    return %c0_i32, %arg1, %c0_i32_0, %c0_i32_1 : i32, i32, i32, i32
  }
  func.func @transform_5(%arg0: i32, %arg1: i32) -> (i32, i32, i32, i32) {
    %c0_i32 = arith.constant 0 : i32
    %c0_i32_0 = arith.constant 0 : i32
    %c0_i32_1 = arith.constant 0 : i32
    return %arg0, %arg1, %c0_i32, %c0_i32_0 : i32, i32, i32, i32
  }
}

</mosaic_0001>

<bundles_post_ra>
// kernel: light_layer_attention_module.1
= control target key start
LH: loop header
LB: loop body
LE: loop exit
PB: predicated region body
PF: predicated region fallthrough
CT: control target
= control target key end

     0   :  { %s940_s18 = smov 0   ;;  %s942_s19 = smov 0   ;;  %s1129_s0 = inlined_call_operand.vmem [shape: f32[2,2,32,64], index: 0, kind: input, shape index: {}]   ;;  %s1130_s1 = inlined_call_operand.vmem [shape: f32[2,2,32,64], index: 1, kind: input, shape index: {}]   ;;  %s1131_s2 = inlined_call_operand.vmem [shape: f32[1,2,32,1], index: 2, kind: input, shape index: {}]   ;;  %s1132_s3 = inlined_call_operand.vmem [shape: f32[1,2,32,1], index: 3, kind: input, shape index: {}]   ;;  %s1133_s4 = inlined_call_operand.vmem [shape: f32[1,2,32,1], index: 4, kind: input, shape index: {}]   ;;  %s1134_s5 = inlined_call_operand.vmem [shape: f32[2,2,32,64], index: 5, kind: output, shape index: {}]  }
   0x1   :  { %s944_s20 = smov 0  }
   0x2 LB: > { %s27_s21 = sadd.s32 1, %s902_s19  ;;  %p833_p0 = scmp.ge.s32.totalorder %s906_s20, 1  ;;  %s906_s20 = sphi %s944_s20, %s15_s20   ;;  %s902_s19 = sphi %s942_s19, %s1136_s19   ;;  %s898_s18 = sphi %s940_s18, %s1135_s18  }
   0x3   : > { %p29_p1 = scmp.ge.s32.totalorder %s27_s21, 2  ;;  %p263_p2 = scmp.lt.s32.totalorder %s906_s20, 3 }
   0x5   : > { %s1138_s21 = smov (%p29_p1, %s27_s21), 0  ;;  %p264_p3 = pnand %p833_p0, %p263_p2 }
   0x6   : > { %p330_p4 = scmp.lt.s32.totalorder (!%p264_p3), %s898_s18, 1 }
   0x7   : > { %267 = sbr.rel (%p264_p3) target bundleno = 347 (0x15b), region = 40 }
   0xc   : > { %s1140_s18 = smov (!%p330_p4, %s898_s18), 1  ;;  %vm391_vm0 = vcmask 523264   ;;  %v908_v16 = vmov 64.0   ;;  %v443_v30 = vld [vmem:[%s1131_s2 + $0x20] sm:$0xff]  ;;  %v444_v39 = vld [vmem:[%s1131_s2 + $0x28] sm:$0xff]  ;;  %v441_v43 = vld [vmem:[%s1131_s2 + $0x10] sm:$0xff] }
   0xd   : > { %s958_s22 = sshll.u32 %s1140_s18, 6  ;;  %874 = vrcp.f32 %v908_v16  ;;  %v439_v37 = vld [vmem:[%s1131_s2] sm:$0xff]  ;;  %v440_v40 = vld [vmem:[%s1131_s2 + $0x8] sm:$0xff]  ;;  %v445_v46 = vld [vmem:[%s1131_s2 + $0x30] sm:$0xff]  ;;  %vm455_vm2 = vcmask 7168   ;;  %v909_v52 = vmov 0  }
   0xe   : > { %s338_s25 = scalar_lea.vmem %s1129_s0, %s958_s22  ;;  %871 = vset.pattern.permute.xlu0 %v909_v52  ;;  %v536_v53 = vld [vmem:[%s1133_s4] sm:$0xff]  ;;  %872 = vset.pattern.permute.xlu2 %v909_v52  ;;  %v539_v16 = vld [vmem:[%s1133_s4 + $0x18] sm:$0xff]  ;;  %s1080_s9 = scalar_lea.vmem %s1130_s1, %s958_s22 }
   0xf   : > { %v964_v0 = vld [vmem:[%s338_s25 + $0x20] sm:$0xff]  ;;  %v968_v2 = vld [vmem:[%s338_s25 + $0x10] sm:$0xff]  ;;  %v976_v6 = vld [vmem:[%s338_s25 + $0x28] sm:$0xff]  ;;  %873 = vset.pattern.permute.xlu1 %v909_v52  ;;  %s1088_s12 = scalar_lea.vmem %s1134_s5, %s958_s22 }
  0x10   : > { %v966_v1 = vld [vmem:[%s338_s25] sm:$0xff]  ;;  %v404_v3 = vsel %vm391_vm0, %v964_v0, 0.0  ;;  %v398_v5 = vsel %vm391_vm0, %v968_v2, 0.0  ;;  %v978_v7 = vld [vmem:[%s338_s25 + $0x8] sm:$0xff]  ;;  %v980_v8 = vld [vmem:[%s338_s25 + $0x30] sm:$0xff]  ;;  %v407_v9 = vsel %vm391_vm0, %v976_v6, 0.0 }
  0x11   : > { %v392_v4 = vsel %vm391_vm0, %v966_v1, 0.0  ;;  %405 = vadd.xlane.f32.xlu1 %v404_v3  ;;  %399 = vadd.xlane.f32.xlu2 %v398_v5  ;;  %v395_v10 = vsel %vm391_vm0, %v978_v7, 0.0  ;;  %v410_v11 = vsel %vm391_vm0, %v980_v8, 0.0  ;;  %v988_v12 = vld [vmem:[%s338_s25 + $0x38] sm:$0xff] }
  0x12   : > { %393 = vadd.xlane.f32.xlu0 %v392_v4  ;;  %v990_v13 = vld [vmem:[%s338_s25 + $0x18] sm:$0xff]  ;;  %v413_v14 = vsel %vm391_vm0, %v988_v12, 0.0 }
  0x13   : > { %v401_v15 = vsel %vm391_vm0, %v990_v13, 0.0  ;;  %v875_v17 = vpop.eup %874  ;;  %v446_v4 = vld [vmem:[%s1131_s2 + $0x38] sm:$0xff] }
  0x14   : > { %v417_v18 = vmul.f32 64.0, %v875_v17  ;;  %vm421_vm1 = vweird.f32 %v875_v17  ;;  %v442_v5 = vld [vmem:[%s1131_s2 + $0x18] sm:$0xff] }
  0x16   : > { %v418_v19 = vsub.f32 1.0, %v417_v18 }
  0x18   : > { %v419_v20 = vmul.f32 %v875_v17, %v418_v19 }
  0x19   : > { %408 = vadd.xlane.f32.xlu1 %v407_v9  ;;  %411 = vadd.xlane.f32.xlu2 %v410_v11 }
  0x1a   : > { %396 = vadd.xlane.f32.xlu0 %v395_v10  ;;  %v420_v21 = vadd.f32 %v875_v17, %v419_v20 }
  0x1c   : > { %v422_v25 = vsel %vm421_vm1, %v875_v17, %v420_v21  ;;  %v538_v17 = vld [vmem:[%s1133_s4 + $0x10] sm:$0xff] }
  0x21   : > { %414 = vadd.xlane.f32.xlu1 %v413_v14 }
  0x22   : > { %402 = vadd.xlane.f32.xlu0 %v401_v15  ;;  %v537_v15 = vld [vmem:[%s1133_s4 + $0x8] sm:$0xff] }
  0x31   : > { %607 = vperm.xlu2 %872, %v537_v15  }
  0x36   : > { %602 = vperm.xlu0 %871, %v536_v53  }
  0x3a   : > { %612 = vperm.xlu1 %873, %v538_v17   ;;  %v525_v17 = vld [vmem:[%s1132_s3 + $0x28] sm:$0xff] }
  0x3e   : > { %617 = vperm.xlu0 %871, %v539_v16  }
  0x84   : > { %v406_v22 = vpop.xlane.xlu1 %405  ;;  %v400_v24 = vpop.xlane.xlu2 %399 }
  0x85   : > { %v394_v23 = vpop.xlane.xlu0 %393  ;;  %v427_v26 = vmul.f32 %v422_v25, %v406_v22  ;;  %v425_v28 = vmul.f32 %v422_v25, %v400_v24 }
  0x86   : > { %v423_v27 = vmul.f32 %v422_v25, %v394_v23 }
  0x87   : > { %v435_v29 = vmul.f32 %v427_v26, %v427_v26  ;;  %v433_v38 = vmul.f32 %v425_v28, %v425_v28  ;;  %v540_v28 = vld [vmem:[%s1133_s4 + $0x20] sm:$0xff] }
  0x88   : > { %v431_v33 = vmul.f32 %v423_v27, %v423_v27  ;;  %622 = vperm.xlu2 %872, %v540_v28  }
  0x89   : > { %v451_v42 = vmul.f32 %v443_v30, %v435_v29  ;;  %v449_v51 = vmul.f32 %v441_v43, %v433_v38 }
  0x8a   : > { %v447_v48 = vmul.f32 %v439_v37, %v431_v33 }
  0x8b   : > { %v469_v54 = vsel %vm455_vm2, %v451_v42, 0.0  ;;  %v459_v9 = vsel %vm455_vm2, %v449_v51, 0.0 }
  0x8c   : > { %v409_v31 = vpop.xlane.xlu1 %408  ;;  %v412_v36 = vpop.xlane.xlu2 %411  ;;  %v456_v60 = vsel %vm455_vm2, %v447_v48, 0.0 }
  0x8d   : > { %v397_v32 = vpop.xlane.xlu0 %396  ;;  %v428_v34 = vmul.f32 %v422_v25, %v409_v31  ;;  %v429_v41 = vmul.f32 %v422_v25, %v412_v36 }
  0x8e   : > { %v424_v35 = vmul.f32 %v422_v25, %v397_v32 }
  0x8f   : > { %v436_v44 = vmul.f32 %v428_v34, %v428_v34  ;;  %v437_v47 = vmul.f32 %v429_v41, %v429_v41 }
  0x90   : > { %v432_v45 = vmul.f32 %v424_v35, %v424_v35 }
  0x91   : > { %v452_v49 = vmul.f32 %v444_v39, %v436_v44  ;;  %v453_v57 = vmul.f32 %v445_v46, %v437_v47 }
  0x92   : > { %v448_v50 = vmul.f32 %v440_v40, %v432_v45 }
  0x93   : > { %v470_v55 = vsel %vm455_vm2, %v452_v49, 0.0  ;;  %v472_v10 = vsel %vm455_vm2, %v453_v57, 0.0 }
  0x94   : > { %v457_v56 = vsel %vm455_vm2, %v448_v50, 0.0  ;;  %v415_v58 = vpop.xlane.xlu1 %414  ;;  %v471_v63 = vadd.f32 %v470_v55, %v469_v54 }
  0x95   : > { %v403_v59 = vpop.xlane.xlu0 %402  ;;  %v430_v61 = vmul.f32 %v422_v25, %v415_v58  ;;  %v458_v3 = vadd.f32 %v457_v56, %v456_v60  ;;  %v522_v58 = vld [vmem:[%s1132_s3 + $0x10] sm:$0xff]  ;;  %v521_v60 = vld [vmem:[%s1132_s3 + $0x8] sm:$0xff] }
  0x96   : > { %v426_v62 = vmul.f32 %v422_v25, %v403_v59  ;;  %v473_v20 = vadd.f32 %v472_v10, %v471_v63 }
  0x97   : > { %v438_v11 = vmul.f32 %v430_v61, %v430_v61  ;;  %v460_v21 = vadd.f32 %v459_v9, %v458_v3  ;;  %v520_v61 = vld [vmem:[%s1132_s3] sm:$0xff] }
  0x98   : > { %v434_v14 = vmul.f32 %v426_v62, %v426_v62 }
  0x99   : > { %v454_v18 = vmul.f32 %v446_v4, %v438_v11 }
  0x9a   : > { %v450_v19 = vmul.f32 %v442_v5, %v434_v14 }
  0x9b   : > { %v474_v22 = vsel %vm455_vm2, %v454_v18, 0.0  ;;  %v523_v18 = vld [vmem:[%s1132_s3 + $0x18] sm:$0xff] }
  0x9c   : > { %v461_v23 = vsel %vm455_vm2, %v450_v19, 0.0  ;;  %v475_v24 = vadd.f32 %v474_v22, %v473_v20  ;;  %v542_v19 = vld [vmem:[%s1133_s4 + $0x30] sm:$0xff]  ;;  %v527_v22 = vld [vmem:[%s1132_s3 + $0x38] sm:$0xff] }
  0x9d   : > { %v462_v25 = vadd.f32 %v461_v23, %v460_v21  ;;  %v524_v23 = vld [vmem:[%s1132_s3 + $0x20] sm:$0xff] }
  0x9e   : > { %v476_v26 = vrot.slane %v475_v24, 4 }
  0x9f   : > { %v463_v27 = vrot.slane %v462_v25, 4 }
  0xa0   : > { %v477_v29 = vadd.f32 %v476_v26, %v475_v24  ;;  %v526_v26 = vld [vmem:[%s1132_s3 + $0x30] sm:$0xff] }
  0xa1   : > { %v464_v30 = vadd.f32 %v463_v27, %v462_v25  ;;  %v541_v27 = vld [vmem:[%s1133_s4 + $0x28] sm:$0xff] }
  0xa2   : > { %v478_v31 = vrot.slane %v477_v29, 2 }
  0xa3   : > { %v465_v32 = vrot.slane %v464_v30, 2 }
  0xa4   : > { %v479_v33 = vadd.f32 %v478_v31, %v477_v29  ;;  %v543_v29 = vld [vmem:[%s1133_s4 + $0x38] sm:$0xff] }
  0xa5   : > { %v466_v34 = vadd.f32 %v465_v32, %v464_v30  ;;  %v608_v30 = vpop.permute.xlu2 %607 }
  0xa6   : > { %v480_v35 = vrot.slane %v479_v33, 1 }
  0xa7   : > { %v467_v36 = vrot.slane %v466_v34, 1 }
  0xa8   : > { %v481_v37 = vadd.f32 %v480_v35, %v479_v33  ;;  %v603_v32 = vpop.permute.xlu0 %602  ;;  %v592_v33 = vld [vmem:[%s1080_s9] sm:$0xff] }
  0xa9   : > { %v468_v38 = vadd.f32 %v467_v36, %v466_v34  ;;  %v640_v34 = vmul.f32 %v603_v32, %v592_v33 }
  0xaa   : > { %v483_v39 = vsub.f32 0.0, %v481_v37 }
  0xab   : > { %v482_v40 = vsub.f32 0.0, %v468_v38  ;;  %v595_v38 = vld [vmem:[%s1080_s9 + $0x18] sm:$0xff] }
  0xac   : > { %v486_v41 = vmul.f32 1.442695, %v483_v39 }
  0xad   : > { %v484_v42 = vmul.f32 1.442695, %v482_v40 }
  0xae   : > { %876 = vpow2.f32 %v486_v41 }
  0xaf   : > { %878 = vpow2.f32 %v484_v42 }
  0xb0   : > { %v618_v39 = vpop.permute.xlu0 %617 }
  0xb1   : > { %v643_v40 = vmul.f32 %v618_v39, %v595_v38 }
  0xb4   : > { %v877_v43 = vpop.eup %876 }
  0xb5   : > { %v879_v44 = vpop.eup %878  ;;  %v489_v45 = vadd.f32 1.0, %v877_v43  ;;  %v613_v43 = vpop.permute.xlu1 %612 }
  0xb6   : > { %v488_v46 = vadd.f32 1.0, %v879_v44  ;;  %v596_v44 = vld [vmem:[%s1080_s9 + $0x20] sm:$0xff] }
  0xb7   : > { %880 = vrcp.f32 %v489_v45  ;;  %vm510_vm8 = vweird.f32 %v489_v45  ;;  %v516_v4 = vand.u32 2147483648, %v489_v45  ;;  %v514_v11 = vand.u32 2147483647, %v489_v45 }
  0xb8   : > { %882 = vrcp.f32 %v488_v46  ;;  %v501_v53 = vand.u32 2147483648, %v488_v46  ;;  %v499_v55 = vand.u32 2147483647, %v488_v46  ;;  %vm495_vm4 = vweird.f32 %v488_v46 }
  0xb9   : > { %v517_v15 = vor.u32 1.1754944e-38, %v516_v4  ;;  %vm515_vm10 = vcmp.eq.f32.partialorder %v514_v11, 8.507059e+37 }
  0xba   : > { %v502_v59 = vor.u32 1.1754944e-38, %v501_v53  ;;  %vm500_vm6 = vcmp.eq.f32.partialorder %v499_v55, 8.507059e+37 }
  0xbd   : > { %v881_v47 = vpop.eup %880 }
  0xbe   : > { %v883_v48 = vpop.eup %882  ;;  %v506_v49 = vmul.f32 %v881_v47, %v489_v45  ;;  %vm511_vm7 = vweird.f32 %v881_v47 }
  0xbf   : > { %v491_v50 = vmul.f32 %v883_v48, %v488_v46  ;;  %vm496_vm3 = vweird.f32 %v883_v48  ;;  %vm512_vm9 = vmor %vm510_vm8, %vm511_vm7 }
  0xc0   : > { %v507_v51 = vsub.f32 1.0, %v506_v49  ;;  %vm497_vm5 = vmor %vm495_vm4, %vm496_vm3  ;;  %v593_v49 = vld [vmem:[%s1080_s9 + $0x8] sm:$0xff] }
  0xc1   : > { %v492_v52 = vsub.f32 1.0, %v491_v50  ;;  %v594_v50 = vld [vmem:[%s1080_s9 + $0x10] sm:$0xff] }
  0xc2   : > { %v508_v56 = vmul.f32 %v881_v47, %v507_v51  ;;  %v642_v53 = vmul.f32 %v613_v43, %v594_v50 }
  0xc3   : > { %v493_v54 = vmul.f32 %v883_v48, %v492_v52 }
  0xc4   : > { %v509_v63 = vadd.f32 %v881_v47, %v508_v56 }
  0xc5   : > { %v494_v57 = vadd.f32 %v883_v48, %v493_v54 }
  0xc6   : > { %v513_v14 = vsel %vm512_vm9, %v881_v47, %v509_v63 }
  0xc7   : > { %v498_v62 = vsel %vm497_vm5, %v883_v48, %v494_v57  ;;  %v518_v16 = vsel %vm515_vm10, %v517_v15, %v513_v14 }
  0xc8   : > { %v503_v3 = vsel %vm500_vm6, %v502_v59, %v498_v62  ;;  %v533_v20 = vmul.f32 %v525_v17, %v518_v16  ;;  %v535_v24 = vmul.f32 %v527_v22, %v518_v16  ;;  %v532_v25 = vmul.f32 %v524_v23, %v518_v16 }
  0xc9   : > { %v530_v5 = vmul.f32 %v522_v58, %v503_v3  ;;  %v529_v9 = vmul.f32 %v521_v60, %v503_v3  ;;  %v528_v10 = vmul.f32 %v520_v61, %v503_v3  ;;  %v531_v21 = vmul.f32 %v523_v18, %v503_v3 }
  0xca   : > { %v534_v28 = vmul.f32 %v526_v26, %v518_v16 }
  0xcb   : > { %556 = vperm.xlu1 %873, %v530_v5   ;;  %551 = vperm.xlu0 %871, %v529_v9  }
  0xcc   : > { %546 = vperm.xlu2 %872, %v528_v10   ;;  %v597_v10 = vld [vmem:[%s1080_s9 + $0x28] sm:$0xff] }
  0xd3   : > { %571 = vperm.xlu1 %873, %v533_v20   ;;  %632 = vperm.xlu0 %871, %v542_v19  }
  0xd4   : > { %561 = vperm.xlu2 %872, %v531_v21  }
  0xdb   : > { %581 = vperm.xlu1 %873, %v535_v24  }
  0xdc   : > { %566 = vperm.xlu2 %872, %v532_v25  }
  0xe2   : > { %v623_v31 = vpop.permute.xlu2 %622 }
  0xe3   : > { %627 = vperm.xlu1 %873, %v541_v27   ;;  %v644_v46 = vmul.f32 %v623_v31, %v596_v44 }
  0xe4   : > { %576 = vperm.xlu2 %872, %v534_v28  }
  0xec   : > { %637 = vperm.xlu2 %872, %v543_v29  }
 0x126   : > { %v547_v35 = vpop.permute.xlu2 %546 }
 0x127   : > { %v584_v36 = vmul.f32 %v547_v35, %v966_v1 }
 0x129   : > { %v648_v37 = vadd.f32 %v640_v34, %v584_v36 }
 0x12b   : > { %656 = vst.msk [vmem:[%s1088_s12] sm:$0xff] %vm391_vm0, %v648_v37 }
 0x12e   : > { %v562_v41 = vpop.permute.xlu2 %561 }
 0x12f   : > { %v587_v42 = vmul.f32 %v562_v41, %v990_v13  ;;  %v641_v13 = vmul.f32 %v608_v30, %v593_v49 }
 0x131   : > { %v651_v1 = vadd.f32 %v643_v40, %v587_v42 }
 0x133   : > { %659 = vst.msk [vmem:[%s1088_s12 + $0x18] sm:$0xff] %vm391_vm0, %v651_v1 }
 0x136   : > { %v567_v45 = vpop.permute.xlu2 %566 }
 0x137   : > { %v588_v47 = vmul.f32 %v567_v45, %v964_v0  ;;  %v598_v0 = vld [vmem:[%s1080_s9 + $0x30] sm:$0xff] }
 0x139   : > { %v652_v48 = vadd.f32 %v644_v46, %v588_v47 }
 0x13b   : > { %660 = vst.msk [vmem:[%s1088_s12 + $0x20] sm:$0xff] %vm391_vm0, %v652_v48 }
 0x13d   : > { %v557_v51 = vpop.permute.xlu1 %556  ;;  %v552_v52 = vpop.permute.xlu0 %551 }
 0x13e   : > { %v586_v54 = vmul.f32 %v557_v51, %v968_v2  ;;  %v585_v55 = vmul.f32 %v552_v52, %v978_v7  ;;  %v577_v58 = vpop.permute.xlu2 %576  ;;  %v599_v2 = vld [vmem:[%s1080_s9 + $0x38] sm:$0xff] }
 0x13f   : > { %v590_v61 = vmul.f32 %v577_v58, %v980_v8 }
 0x140   : > { %v650_v56 = vadd.f32 %v642_v53, %v586_v54  ;;  %v649_v57 = vadd.f32 %v641_v13, %v585_v55 }
 0x142   : > { %658 = vst.msk [vmem:[%s1088_s12 + $0x10] sm:$0xff] %vm391_vm0, %v650_v56 }
 0x143   : > { %657 = vst.msk [vmem:[%s1088_s12 + $0x8] sm:$0xff] %vm391_vm0, %v649_v57 }
 0x145   : > { %v572_v59 = vpop.permute.xlu1 %571  ;;  %v633_v60 = vpop.permute.xlu0 %632 }
 0x146   : > { %v646_v62 = vmul.f32 %v633_v60, %v598_v0  ;;  %v638_v7 = vpop.permute.xlu2 %637  ;;  %v589_v14 = vmul.f32 %v572_v59, %v976_v6 }
 0x147   : > { %v647_v4 = vmul.f32 %v638_v7, %v599_v2 }
 0x148   : > { %v654_v63 = vadd.f32 %v646_v62, %v590_v61 }
 0x14a   : > { %662 = vst.msk [vmem:[%s1088_s12 + $0x30] sm:$0xff] %vm391_vm0, %v654_v63 }
 0x14d   : > { %v582_v3 = vpop.permute.xlu1 %581 }
 0x14e   : > { %v591_v5 = vmul.f32 %v582_v3, %v988_v12 }
 0x150   : > { %v655_v9 = vadd.f32 %v647_v4, %v591_v5 }
 0x152   : > { %663 = vst.msk [vmem:[%s1088_s12 + $0x38] sm:$0xff] %vm391_vm0, %v655_v9 }
 0x155   : > { %v628_v11 = vpop.permute.xlu1 %627 }
 0x156   : > { %v645_v15 = vmul.f32 %v628_v11, %v597_v10 }
 0x158   : > { %v653_v8 = vadd.f32 %v645_v15, %v589_v14 }
 0x15a   : > { %661 = vst.msk [vmem:[%s1088_s12 + $0x28] sm:$0xff] %vm391_vm0, %v653_v8 }
 0x15b PF: > { %s15_s20 = sadd.s32 1, %s906_s20   ;;  %s1135_s18 = smov %s902_s19 }
 0x15c   : > { %p12_p5 = scmp.ge.s32.totalorder %s15_s20, 4   ;;  %s1136_s19 = smov %s1138_s21 }
 0x15e   :  { %14 = sbr.rel (!%p12_p5) target bundleno = 2 (0x2), region = 82 }

</bundles_post_ra>
